<compile_context>
chip_gen: v6e
topology: v6e:2x2x1
jax: 0.10.0
libtpu: 0.0.40
codegen_flags: <defaults>
</compile_context>

<pallas_src>
import functools
import math

import numpy as np

import jax
import jax.numpy as jnp
from jax import lax
from jax.experimental import pallas as pl
from jax.experimental.pallas import tpu as pltpu


def _round_up(x, m):
    return ((x + m - 1) // m) * m


def _vmem_capacity_bytes():
    """Physical VMEM per core; conservative 64 MiB fallback (v7x-sized)."""
    try:
        info = pltpu.get_tpu_info()
        cap = getattr(info, "vmem_capacity_bytes", None)
        if cap:
            return int(cap)
    except Exception:
        pass
    return 64 * 1024 * 1024


def _row_parallel_linear_kernel(x_ref, w_ref, b_ref, o_ref, acc_ref):
    # x_ref  : (tm, tk)  input tile           (tk may be the full K)
    # w_ref  : (tn, tk)  weight tile, native (N, K) layout
    # b_ref  : (1, tn)   bias tile
    # o_ref  : (tm, tn)  output tile
    # acc_ref: (tm, tn)  f32 accumulator, persists across the K grid axis
    k = pl.program_id(2)

    @pl.when(k == 0)
    def _():
        acc_ref[...] = jnp.zeros_like(acc_ref)

    # Contract the last dims of both operands: (tm, tk) x (tn, tk) -> (tm, tn)
    # == x_tile @ w_tile.T, natively on the MXU with f32 accumulation.
    acc_ref[...] += lax.dot_general(
        x_ref[...],
        w_ref[...],
        dimension_numbers=(((1,), (1,)), ((), ())),
        preferred_element_type=jnp.float32,
    )

    @pl.when(k == pl.num_programs(2) - 1)
    def _():
        o_ref[...] = (acc_ref[...] + b_ref[...].astype(jnp.float32)).astype(o_ref.dtype)


@functools.partial(jax.jit, static_argnames=("skip_bias_add",))
def row_parallel_linear_fwd(x, weight, bias=None, *, skip_bias_add=False):
    """Forward pass of RowParallelLinear (world_size == 1).

    x:      (..., input_size)
    weight: (output_size, input_size)   -- native F.linear layout, NOT transposed
    bias:   (output_size,) or None
    returns (output, output_bias); output_bias is None unless skip_bias_add.
    """
    *lead, K = x.shape
    N, Kw = weight.shape
    assert Kw == K, "weight must be (output_size, input_size)"
    M = math.prod(lead) if lead else 1

    out_dtype = x.dtype
    x2d = x.reshape(M, K)
    if weight.dtype != x.dtype:
        weight = weight.astype(x.dtype)

    # ---- pad N / K to lane-aligned (128) multiples; zero padding is exact ----
    N_pad = _round_up(N, 128)
    K_pad = _round_up(K, 128)
    if K_pad != K:
        x2d = jnp.pad(x2d, ((0, 0), (0, K_pad - K)))
    if (N_pad != N) or (K_pad != K):
        weight = jnp.pad(weight, ((0, N_pad - N), (0, K_pad - K)))

    add_bias = (bias is not None) and (not skip_bias_add)
    if add_bias:
        b = bias.astype(out_dtype)
        if N_pad != N:
            b = jnp.pad(b, (0, N_pad - N))
    else:
        b = jnp.zeros((N_pad,), out_dtype)   # adding zeros == no bias
    b2d = b.reshape(1, N_pad)

    x_isz = jnp.dtype(x2d.dtype).itemsize
    w_isz = jnp.dtype(weight.dtype).itemsize
    o_isz = jnp.dtype(out_dtype).itemsize

    # ---- generation-aware VMEM budget --------------------------------------
    vmem_cap = _vmem_capacity_bytes()                       # 128 MiB v5e/v6e, 64 MiB v7x
    vmem_limit = max(32 << 20, min((vmem_cap * 3) // 4, 100 << 20))
    budget = int(vmem_limit * 0.85)                         # headroom for compiler internals

    # ---- tile selection (static, trace-time Python) ------------------------
    sub = {4: 8, 2: 16, 1: 32}.get(x_isz, 8)                # sublane packing
    tm = min(512, _round_up(M, sub))

    tn_cands = [t for t in (2048, 1024, 512, 256, 128) if N_pad % t == 0] or [N_pad]
    tk_cands = [t for t in (2048, 1024, 512, 256, 128) if K_pad % t == 0] or [K_pad]

    # v7x megacore: if the M axis has a single block, keep >=2 blocks on N.
    if pl.cdiv(M, tm) == 1:
        multi = [t for t in tn_cands if N_pad // t >= 2]
        if multi:
            tn_cands = multi

    def ws_bytes(tn_, tk_, tm_):
        return (2 * tm_ * tk_ * x_isz          # x tile (double-buffered)
                + 2 * tn_ * tk_ * w_isz        # weight tile
                + 2 * tn_ * o_isz              # bias tile
                + 2 * tm_ * tn_ * o_isz        # output tile
                + tm_ * tn_ * 4)               # f32 accumulator scratch

    tn = tk = None
    # 1) Prefer a full-K panel (tk == K_pad): x's block index is then constant
    #    across the whole N sweep, so x is DMA'd from HBM exactly once.
    for t in tn_cands:
        if ws_bytes(t, K_pad, tm) <= budget:
            tn, tk = t, K_pad
            break
    # 2) Otherwise stream K: maximize tn first (cuts x re-reads), then tk.
    if tn is None:
        for t in tn_cands:
            for s in tk_cands:
                if ws_bytes(t, s, tm) <= budget:
                    tn, tk = t, s
                    break
            if tn is not None:
                break
    # 3) Last resort: shrink tm until the smallest tiles fit.
    if tn is None:
        tn, tk = tn_cands[-1], tk_cands[-1]
        while tm > sub and ws_bytes(tn, tk, tm) > budget:
            tm = max(sub, tm // 2)

    grid_m = pl.cdiv(M, tm)                                 # ragged last M block OK
    grid_n = N_pad // tn
    grid_k = K_pad // tk
    grid = (grid_m, grid_n, grid_k)

    # ---- advisory cost estimate reflecting actual tiled HBM traffic --------
    x_reads = 1 if grid_k == 1 else grid_n                  # x re-read per N block if K tiled
    cost = pl.CostEstimate(
        flops=2 * M * N_pad * K_pad,
        transcendentals=0,
        bytes_accessed=int(x_reads * M * K_pad * x_isz
                           + grid_m * N_pad * K_pad * w_isz
                           + M * N_pad * o_isz
                           + grid_m * N_pad * o_isz),
    )

    out2d = pl.pallas_call(
        _row_parallel_linear_kernel,
        out_shape=jax.ShapeDtypeStruct((M, N_pad), out_dtype),
        grid_spec=pltpu.PrefetchScalarGridSpec(
            num_scalar_prefetch=0,
            grid=grid,
            in_specs=[
                pl.BlockSpec((tm, tk), lambda i, j, k: (i, k)),   # x tile
                pl.BlockSpec((tn, tk), lambda i, j, k: (j, k)),   # weight (N, K) tile
                pl.BlockSpec((1, tn), lambda i, j, k: (0, j)),    # bias tile
            ],
            out_specs=pl.BlockSpec((tm, tn), lambda i, j, k: (i, j)),
            scratch_shapes=[pltpu.VMEM((tm, tn), jnp.float32)],
        ),
        compiler_params=pltpu.CompilerParams(
            dimension_semantics=("parallel", "parallel", "arbitrary"),
            vmem_limit_bytes=int(vmem_limit),
        ),
        cost_estimate=cost,
    )(x2d, weight, b2d)

    if N_pad != N:
        out2d = out2d[:, :N]
    output = out2d.reshape(*lead, N)
    output_bias = bias if skip_bias_add else None
    return output, output_bias


def init_row_parallel_linear_params(key, input_size, output_size, dtype=jnp.float32):
    """Parameter init matching the module's __init__ (world_size == 1):
    weight ~ xavier_normal_, shape (output_size, input_size_per_partition);
    bias   = zeros(output_size).
    """
    # TODO(synk): CUDA-RNG-tracker fork / CPU-vs-GPU init paths have no Pallas
    # equivalent; plain xavier-normal init is used instead.
    std = (2.0 / (input_size + output_size)) ** 0.5
    weight = (jax.random.normal(key, (output_size, input_size), jnp.float32) * std).astype(dtype)
    bias = jnp.zeros((output_size,), dtype=dtype)
    return weight, bias


if __name__ == "__main__":
    batch, seq = 2, 8
    input_size, output_size = 32, 64   # small hidden sizes

    key = jax.random.PRNGKey(0)
    k_x, k_w = jax.random.split(key)

    x = jax.random.normal(k_x, (batch, seq, input_size), jnp.float32)
    weight, bias = init_row_parallel_linear_params(k_w, input_size, output_size)

    out, out_bias = row_parallel_linear_fwd(x, weight, bias)
    out = jax.block_until_ready(out)

    # Reference check against full-precision numpy (F.linear + bias).
    ref = (np.asarray(x, np.float32).reshape(-1, input_size)
           @ np.asarray(weight, np.float32).T
           + np.asarray(bias, np.float32)).reshape(batch, seq, output_size)

    assert out.shape == (batch, seq, output_size)
    assert out_bias is None
    assert np.allclose(np.asarray(out), ref, atol=2e-5, rtol=2e-5)

    print("KERNEL_OK")
</pallas_src>

<mosaic_0001>
module attributes {stable_mosaic.version = 11 : i64} {
  func.func @_row_parallel_linear_kernel(%arg0: i32, %arg1: i32, %arg2: i32, %arg3: memref<16x128xf32, #tpu.memory_space<vmem>>, %arg4: memref<128x128xf32, #tpu.memory_space<vmem>>, %arg5: memref<1x128xf32, #tpu.memory_space<vmem>>, %arg6: memref<16x128xf32, #tpu.memory_space<vmem>>, %arg7: memref<16x128xf32, #tpu.memory_space<vmem>>) attributes {dimension_semantics = [#tpu.dimension_semantics<parallel>, #tpu.dimension_semantics<parallel>, #tpu.dimension_semantics<arbitrary>], iteration_bounds = array<i64: 1, 1, 1>, scalar_prefetch = 0 : i64, scratch_operands = 1 : i64, tpu.core_type = #tpu.core_type<tc>, window_params = [{transform_indices = @transform_0, window_bounds = array<i64: 16, 128>}, {transform_indices = @transform_1, window_bounds = array<i64: 128, 128>}, {transform_indices = @transform_2, window_bounds = array<i64: 1, 128>}, {transform_indices = @transform_3, window_bounds = array<i64: 16, 128>}]} {
    %c0_i32 = arith.constant 0 : i32
    %0 = arith.cmpi eq, %arg2, %c0_i32 : i32
    %1 = arith.extui %0 : i1 to i32
    %c0_i32_0 = arith.constant 0 : i32
    %2 = arith.cmpi ne, %1, %c0_i32_0 : i32
    scf.if %2 {
      %cst_10 = arith.constant 0.000000e+00 : f32
      %12 = vector.broadcast %cst_10 : f32 to vector<16x128xf32>
      %c0_11 = arith.constant 0 : index
      %c0_12 = arith.constant 0 : index
      %13 = vector.load %arg7[%c0_11, %c0_12] : memref<16x128xf32, #tpu.memory_space<vmem>>, vector<16x128xf32>
      tpu.vector_store %arg7[%c0_11, %c0_12], %12 {strides = array<i32>} : memref<16x128xf32, #tpu.memory_space<vmem>>, vector<16x128xf32>,
    } else {
    }
    %c0 = arith.constant 0 : index
    %c0_1 = arith.constant 0 : index
    %3 = vector.load %arg7[%c0, %c0_1] : memref<16x128xf32, #tpu.memory_space<vmem>>, vector<16x128xf32>
    %c0_2 = arith.constant 0 : index
    %c0_3 = arith.constant 0 : index
    %4 = vector.load %arg3[%c0_2, %c0_3] : memref<16x128xf32, #tpu.memory_space<vmem>>, vector<16x128xf32>
    %c0_4 = arith.constant 0 : index
    %c0_5 = arith.constant 0 : index
    %5 = vector.load %arg4[%c0_4, %c0_5] : memref<128x128xf32, #tpu.memory_space<vmem>>, vector<128x128xf32>
    %cst = arith.constant dense<0.000000e+00> : vector<16x128xf32>
    %6 = tpu.matmul %4, %5, %cst {dimension_numbers = #tpu.dot_dimension_numbers<[1], [1], [0], [0], [0, 0, 1, 0], [], []>} : vector<16x128xf32>, vector<128x128xf32>, vector<16x128xf32> -> vector<16x128xf32>
    %7 = arith.addf %3, %6 : vector<16x128xf32>
    %c0_6 = arith.constant 0 : index
    %c0_7 = arith.constant 0 : index
    %8 = vector.load %arg7[%c0_6, %c0_7] : memref<16x128xf32, #tpu.memory_space<vmem>>, vector<16x128xf32>
    tpu.vector_store %arg7[%c0_6, %c0_7], %7 {strides = array<i32>} : memref<16x128xf32, #tpu.memory_space<vmem>>, vector<16x128xf32>,
    %c0_i32_8 = arith.constant 0 : i32
    %9 = arith.cmpi eq, %arg2, %c0_i32_8 : i32
    %10 = arith.extui %9 : i1 to i32
    %c0_i32_9 = arith.constant 0 : i32
    %11 = arith.cmpi ne, %10, %c0_i32_9 : i32
    scf.if %11 {
      %c0_10 = arith.constant 0 : index
      %c0_11 = arith.constant 0 : index
      %12 = vector.load %arg7[%c0_10, %c0_11] : memref<16x128xf32, #tpu.memory_space<vmem>>, vector<16x128xf32>
      %c0_12 = arith.constant 0 : index
      %c0_13 = arith.constant 0 : index
      %13 = vector.load %arg5[%c0_12, %c0_13] : memref<1x128xf32, #tpu.memory_space<vmem>>, vector<1x128xf32>
      %14 = vector.broadcast %13 : vector<1x128xf32> to vector<16x128xf32>
      %15 = arith.addf %12, %14 : vector<16x128xf32>
      %c0_14 = arith.constant 0 : index
      %c0_15 = arith.constant 0 : index
      %16 = vector.load %arg6[%c0_14, %c0_15] : memref<16x128xf32, #tpu.memory_space<vmem>>, vector<16x128xf32>
      tpu.vector_store %arg6[%c0_14, %c0_15], %15 {strides = array<i32>} : memref<16x128xf32, #tpu.memory_space<vmem>>, vector<16x128xf32>,
    } else {
    }
    return
  }
  func.func @transform_0(%arg0: i32, %arg1: i32, %arg2: i32) -> (i32, i32) {
    %c0_i32 = arith.constant 0 : i32
    return %arg0, %arg2 : i32, i32
  }
  func.func @transform_1(%arg0: i32, %arg1: i32, %arg2: i32) -> (i32, i32) {
    %c0_i32 = arith.constant 0 : i32
    return %arg1, %arg2 : i32, i32
  }
  func.func @transform_2(%arg0: i32, %arg1: i32, %arg2: i32) -> (i32, i32) {
    %c0_i32 = arith.constant 0 : i32
    %c0_i32_0 = arith.constant 0 : i32
    return %c0_i32, %arg1 : i32, i32
  }
  func.func @transform_3(%arg0: i32, %arg1: i32, %arg2: i32) -> (i32, i32) {
    %c0_i32 = arith.constant 0 : i32
    return %arg0, %arg1 : i32, i32
  }
}

</mosaic_0001>

<bundles_post_ra>
// kernel: row_parallel_linear_fwd.1
= control target key start
LH: loop header
LB: loop body
LE: loop exit
PB: predicated region body
PF: predicated region fallthrough
CT: control target
= control target key end

     0   :  { %s276_s1 = inlined_call_operand.vmem [shape: f32[128,128], index: 1, kind: input, shape index: {}]   ;;  %s277_s0 = inlined_call_operand.vmem [shape: f32[16,128], index: 0, kind: input, shape index: {}]   ;;  %s278_s2 = inlined_call_operand.vmem [shape: f32[1,128], index: 2, kind: input, shape index: {}]   ;;  %s279_s3 = inlined_call_operand.vmem [shape: f32[16,128], index: 3, kind: output, shape index: {}]  }
   0x1   :  { %v39_v0 = vld [vmem:[%s276_s1 + $0x78] sm:$0xff]  ;;  %v38_v1 = vld [vmem:[%s276_s1 + $0x70] sm:$0xff]  ;;  %v37_v2 = vld [vmem:[%s276_s1 + $0x68] sm:$0xff] }
   0x2   :  { %158 = vmatprep.subr.mxu0 %v39_v0  ;;  %v22_v3 = vld [vmem:[%s277_s0] sm:$0xff]  ;;  %v35_v5 = vld [vmem:[%s276_s1 + $0x58] sm:$0xff]  ;;  %v34_v6 = vld [vmem:[%s276_s1 + $0x50] sm:$0xff] }
   0x3   :  { %159 = vmatpush3.xpose.msra.mxu0 %v39_v0  ;;  %190 = vmatprep.mubr.f32.mxu0 %v22_v3  ;;  %v36_v4 = vld [vmem:[%s276_s1 + $0x60] sm:$0xff]  ;;  %v33_v7 = vld [vmem:[%s276_s1 + $0x48] sm:$0xff]  ;;  %v31_v9 = vld [vmem:[%s276_s1 + $0x38] sm:$0xff] }
   0x4   :  { %160 = vmatprep.subr.mxu0 %v38_v1  ;;  %v32_v8 = vld [vmem:[%s276_s1 + $0x40] sm:$0xff]  ;;  %v30_v10 = vld [vmem:[%s276_s1 + $0x30] sm:$0xff]  ;;  %v29_v11 = vld [vmem:[%s276_s1 + $0x28] sm:$0xff] }
   0x5   :  { %v28_v12 = vld [vmem:[%s276_s1 + $0x20] sm:$0xff]  ;;  %v27_v13 = vld [vmem:[%s276_s1 + $0x18] sm:$0xff]  ;;  %v26_v14 = vld [vmem:[%s276_s1 + $0x10] sm:$0xff] }
   0x6   :  { %v25_v15 = vld [vmem:[%s276_s1 + $0x8] sm:$0xff]  ;;  %v24_v16 = vld [vmem:[%s276_s1] sm:$0xff] }
   0x7   :  { %161 = vmatpush3.xpose.msra.mxu0 %v38_v1  ;;  %v23_v17 = vld [vmem:[%s277_s0 + $0x8] sm:$0xff]  ;;  %v139_v18 = vld [vmem:[%s278_s2] ss:$0 sm:$0xff] }
   0x8   :  { %162 = vmatprep.subr.mxu0 %v37_v2 }
   0xb   :  { %163 = vmatpush3.xpose.msra.mxu0 %v37_v2 }
   0xc   :  { %164 = vmatprep.subr.mxu0 %v36_v4 }
   0xf   :  { %165 = vmatpush3.xpose.msra.mxu0 %v36_v4 }
  0x10   :  { %166 = vmatprep.subr.mxu0 %v35_v5 }
  0x13   :  { %167 = vmatpush3.xpose.msra.mxu0 %v35_v5 }
  0x14   :  { %168 = vmatprep.subr.mxu0 %v34_v6 }
  0x17   :  { %169 = vmatpush3.xpose.msra.mxu0 %v34_v6 }
  0x18   :  { %170 = vmatprep.subr.mxu0 %v33_v7 }
  0x1b   :  { %171 = vmatpush3.xpose.msra.mxu0 %v33_v7 }
  0x1c   :  { %172 = vmatprep.subr.mxu0 %v32_v8 }
  0x1f   :  { %173 = vmatpush3.xpose.msra.mxu0 %v32_v8 }
  0x20   :  { %174 = vmatprep.subr.mxu0 %v31_v9 }
  0x23   :  { %175 = vmatpush3.xpose.msra.mxu0 %v31_v9 }
  0x24   :  { %176 = vmatprep.subr.mxu0 %v30_v10 }
  0x27   :  { %177 = vmatpush3.xpose.msra.mxu0 %v30_v10 }
  0x28   :  { %178 = vmatprep.subr.mxu0 %v29_v11 }
  0x2b   :  { %179 = vmatpush3.xpose.msra.mxu0 %v29_v11 }
  0x2c   :  { %180 = vmatprep.subr.mxu0 %v28_v12 }
  0x2f   :  { %181 = vmatpush3.xpose.msra.mxu0 %v28_v12 }
  0x30   :  { %182 = vmatprep.subr.mxu0 %v27_v13 }
  0x33   :  { %183 = vmatpush3.xpose.msra.mxu0 %v27_v13 }
  0x34   :  { %184 = vmatprep.subr.mxu0 %v26_v14 }
  0x37   :  { %185 = vmatpush3.xpose.msra.mxu0 %v26_v14 }
  0x38   :  { %186 = vmatprep.subr.mxu0 %v25_v15 }
  0x3b   :  { %187 = vmatpush3.xpose.msra.mxu0 %v25_v15 }
  0x3c   :  { %188 = vmatprep.subr.mxu0 %v24_v16 }
  0x3f   :  { %189 = vmatpush3.xpose.msra.mxu0 %v24_v16 }
  0x42   :  { %191 = vmatmul.mubr.f32.vlgmr.msra.gmra.mxu0 %v23_v17 }
 0x102   :  { %v192_v19 = vpop.f32.mrf.mxu0 }
 0x103   :  { %v132_v20 = vadd.f32 %v192_v19, %v139_v18 }
 0x104   :  { %v106_v21 = vpop.f32.mrf.mxu0 }
 0x105   :  { %134 = vst [vmem:[%s279_s3 + $0x8] sm:$0xff] %v132_v20  ;;  %v131_v22 = vadd.f32 %v139_v18, %v106_v21 }
 0x107   :  { %133 = vst [vmem:[%s279_s3] sm:$0xff] %v131_v22 }

</bundles_post_ra>
